<compile_context>
chip_gen: v5e
topology: v5e:2x2
jax: 0.10.0
libtpu: 0.0.40
codegen_flags: <defaults>
</compile_context>

<pallas_src>
import functools

import jax
import jax.numpy as jnp
from jax.experimental import pallas as pl
from jax.experimental.pallas import tpu as pltpu


def _fused_conv_kernel(rows_ref, w_ref, b_ref, o_ref, *, G):
    """All G convs in one step; each conv is one dense MXU matmul + bias add.

    rows_ref: (G, N*Ho, K*Wp*Cin)   pre-gathered im2col rows (kh folded in)
    w_ref:    (G, K*Wp*Cin, Wo*Cout) folded block-Toeplitz weights
    b_ref:    (G, 1, Wo*Cout)        bias tiled along Wo
    o_ref:    (G, N*Ho, Wo*Cout)     lane-dense output
    """
    for g in range(G):  # static, fully unrolled (G is 1 or 2)
        acc = jnp.dot(rows_ref[g], w_ref[g],
                      preferred_element_type=jnp.float32)
        o_ref[g] = (acc + b_ref[g]).astype(o_ref.dtype)


def _folded_conv_weight(w_hwio, Wp, Wo):
    """(K, K, Cin, Cout) -> (K*Wp*Cin, Wo*Cout) folded block-Toeplitz weight.

    W[kh*Wp*Cin + (j+kw)*Cin + ci, j*Cout + co] = w[kh, kw, ci, co]
    so that  out[n, i, j*Cout+co] = rows[n*Ho+i, :] @ W
    reproduces the direct (stride-1, dilation-1) convolution.
    """
    K = w_hwio.shape[0]
    Cin, Cout = w_hwio.shape[2], w_hwio.shape[3]
    a = jnp.arange(Wp)[:, None, None]                 # padded-input column
    j = jnp.arange(Wo)[None, :, None]                 # output column
    kw = jnp.arange(K)[None, None, :]                 # tap
    sel = (a == j + kw).astype(w_hwio.dtype)          # (Wp, Wo, K)
    m = jnp.einsum("ajk,hkio->haijo", sel, w_hwio)    # (K, Wp, Cin, Wo, Cout)
    return m.reshape(K * Wp * Cin, Wo * Cout)


def _gather_rows(x_nhwc, K, padding):
    """(N, H, W, Cin) -> (N*Ho, K*Wp*Cin) rows with the kh taps pre-gathered."""
    N, H, W, Cin = x_nhwc.shape
    Hp, Wp = H + 2 * padding, W + 2 * padding
    Ho = Hp - K + 1
    xp = jnp.pad(x_nhwc, ((0, 0), (padding, padding), (padding, padding), (0, 0)))
    xp = xp.reshape(N, Hp, Wp * Cin)
    taps = jnp.stack([xp[:, kh:kh + Ho, :] for kh in range(K)], axis=2)
    return taps.reshape(N * Ho, K * Wp * Cin)         # (N*Ho, K*Wp*Cin)


def fused_conv2d_pallas(xs_nhwc, w_folded, b_tiled, *, K, padding):
    """Run G same-shaped conv2ds in ONE single-step pallas_call.

    xs_nhwc: list of (N, H, W, Cin)
    w_folded: (G, K*Wp*Cin, Wo*Cout) cached folded weights
    b_tiled:  (G, 1, Wo*Cout)        cached tiled biases
    Returns list of (N, Ho, Wo, Cout).
    """
    G = len(xs_nhwc)
    N, H, W, Cin = xs_nhwc[0].shape
    Hp, Wp = H + 2 * padding, W + 2 * padding
    Ho, Wo = Hp - K + 1, Wp - K + 1
    KWC = K * Wp * Cin
    WoCout = w_folded.shape[-1]
    Cout = WoCout // Wo
    M = N * Ho

    rows = jnp.stack([_gather_rows(x, K, padding) for x in xs_nhwc], axis=0)

    kernel = functools.partial(_fused_conv_kernel, G=G)

    out = pl.pallas_call(
        kernel,
        out_shape=jax.ShapeDtypeStruct((G, M, WoCout), xs_nhwc[0].dtype),
        grid_spec=pltpu.PrefetchScalarGridSpec(
            num_scalar_prefetch=0,
            grid=(1,),                                 # single step, no per-step overhead
            in_specs=[
                pl.BlockSpec((G, M, KWC), lambda i: (0, 0, 0)),
                pl.BlockSpec((G, KWC, WoCout), lambda i: (0, 0, 0)),
                pl.BlockSpec((G, 1, WoCout), lambda i: (0, 0, 0)),
            ],
            out_specs=pl.BlockSpec((G, M, WoCout), lambda i: (0, 0, 0)),
        ),
        compiler_params=pltpu.CompilerParams(
            dimension_semantics=("arbitrary",),
        ),
    )(rows, w_folded, b_tiled)

    out = out.reshape(G, N, Ho, Wo, Cout)
    return [out[g] for g in range(G)]


class ConditionerPallas:
    """Pallas port of the PyTorch `Conditioner` module (forward pass)."""

    def __init__(self, dim, dim_out, kernel_size, padding=0, key=None):
        if key is None:
            key = jax.random.PRNGKey(0)
        k_sw, k_sb, k_cw, k_cb = jax.random.split(key, 4)
        fan_in = dim * kernel_size * kernel_size
        scale = 1.0 / jnp.sqrt(fan_in)
        # HWIO weights, deterministic init (mirrors nn.Conv2d's uniform init).
        self.spatial_w = jax.random.uniform(
            k_sw, (kernel_size, kernel_size, dim, dim_out), jnp.float32,
            -scale, scale)
        self.spatial_b = jax.random.uniform(
            k_sb, (dim_out,), jnp.float32, -scale, scale)
        self.cond_w = jax.random.uniform(
            k_cw, (kernel_size, kernel_size, dim, dim_out), jnp.float32,
            -scale, scale)
        self.cond_b = jax.random.uniform(
            k_cb, (dim_out,), jnp.float32, -scale, scale)
        self.padding = padding
        self.kernel_size = kernel_size
        self.dim_out = dim_out
        # Cache of the folded Toeplitz weights / tiled biases, keyed by the
        # input width and which convs are packed.  Built once, reused across
        # forward calls (the expansion is ~100x the raw weight bytes).
        self._packed_cache = {}

    def _packed(self, W, which):
        cache_key = (int(W), which)
        if cache_key not in self._packed_cache:
            K = self.kernel_size
            Wp = W + 2 * self.padding
            Wo = Wp - K + 1
            ws = (self.spatial_w, self.cond_w)
            bs = (self.spatial_b, self.cond_b)
            w_folded = jnp.stack(
                [_folded_conv_weight(ws[g], Wp, Wo) for g in which], axis=0)
            b_tiled = jnp.stack(
                [jnp.tile(bs[g], Wo) for g in which], axis=0)
            b_tiled = b_tiled.reshape(len(which), 1, Wo * self.dim_out)
            self._packed_cache[cache_key] = (w_folded, b_tiled)
        return self._packed_cache[cache_key]

    def __call__(self, hidden_states_nchw, conditioning_hidden_states_nchw):
        # NCHW -> NHWC (wrapper glue)
        h = jnp.transpose(hidden_states_nchw, (0, 2, 3, 1))
        c = jnp.transpose(conditioning_hidden_states_nchw, (0, 2, 3, 1))
        if h.shape == c.shape:
            w_all, b_all = self._packed(h.shape[2], (0, 1))
            h_out, c_out = fused_conv2d_pallas(
                [h, c], w_all, b_all,
                K=self.kernel_size, padding=self.padding)
        else:
            # Differing spatial sizes: two single-conv (still batched) calls.
            w_h, b_h = self._packed(h.shape[2], (0,))
            w_c, b_c = self._packed(c.shape[2], (1,))
            (h_out,) = fused_conv2d_pallas(
                [h], w_h, b_h, K=self.kernel_size, padding=self.padding)
            (c_out,) = fused_conv2d_pallas(
                [c], w_c, b_c, K=self.kernel_size, padding=self.padding)
        # NHWC -> NCHW (match PyTorch output convention)
        return (jnp.transpose(h_out, (0, 3, 1, 2)),
                jnp.transpose(c_out, (0, 3, 1, 2)))


def _conv2d_ref(x_nchw, w_hwio, bias, padding):
    # Reference using XLA conv for a correctness sanity check.
    w_oihw = jnp.transpose(w_hwio, (3, 2, 0, 1))
    out = jax.lax.conv_general_dilated(
        x_nchw, w_oihw, window_strides=(1, 1),
        padding=[(padding, padding), (padding, padding)],
        dimension_numbers=("NCHW", "OIHW", "NCHW"))
    return out + bias.reshape(1, -1, 1, 1)


if __name__ == "__main__":
    # Small shapes consistent with the module: batch=2, dim=4, dim_out=8,
    # spatial=16, kernel_size=3, padding=1.  (Wo*Cout = 16*8 = 128 lanes.)
    N, C_IN, C_OUT, H, W, K, PAD = 2, 4, 8, 16, 16, 3, 1

    key = jax.random.PRNGKey(0)
    k_h, k_c, k_p = jax.random.split(key, 3)
    hidden = jax.random.normal(k_h, (N, C_IN, H, W), jnp.float32)
    cond = jax.random.normal(k_c, (N, C_IN, H, W), jnp.float32)

    model = ConditionerPallas(C_IN, C_OUT, K, padding=PAD, key=k_p)

    h_out, c_out = model(hidden, cond)
    h_out = jax.block_until_ready(h_out)
    c_out = jax.block_until_ready(c_out)

    # Sanity check against XLA's conv.
    h_ref = _conv2d_ref(hidden, model.spatial_w, model.spatial_b, PAD)
    c_ref = _conv2d_ref(cond, model.cond_w, model.cond_b, PAD)
    assert h_out.shape == h_ref.shape and c_out.shape == c_ref.shape
    assert jnp.allclose(h_out, h_ref, atol=1e-4, rtol=1e-4)
    assert jnp.allclose(c_out, c_ref, atol=1e-4, rtol=1e-4)

    print("KERNEL_OK")
</pallas_src>

<mosaic_0001>
module attributes {stable_mosaic.version = 11 : i64} {
  func.func @_fused_conv_kernel(%arg0: i32, %arg1: memref<2x32x216xf32, #tpu.memory_space<vmem>>, %arg2: memref<2x216x128xf32, #tpu.memory_space<vmem>>, %arg3: memref<2x1x128xf32, #tpu.memory_space<vmem>>, %arg4: memref<2x32x128xf32, #tpu.memory_space<vmem>>) attributes {dimension_semantics = [#tpu.dimension_semantics<arbitrary>], iteration_bounds = array<i64: 1>, scalar_prefetch = 0 : i64, scratch_operands = 0 : i64, tpu.core_type = #tpu.core_type<tc>, window_params = [{pipeline_mode = #tpu.pipeline_mode<synchronous>, transform_indices = @transform_0, window_bounds = array<i64: 2, 32, 216>}, {pipeline_mode = #tpu.pipeline_mode<synchronous>, transform_indices = @transform_1, window_bounds = array<i64: 2, 216, 128>}, {pipeline_mode = #tpu.pipeline_mode<synchronous>, transform_indices = @transform_2, window_bounds = array<i64: 2, 1, 128>}, {pipeline_mode = #tpu.pipeline_mode<synchronous>, transform_indices = @transform_3, window_bounds = array<i64: 2, 32, 128>}]} {
    %c0 = arith.constant 0 : index
    %c0_0 = arith.constant 0 : index
    %c0_1 = arith.constant 0 : index
    %0 = vector.load %arg1[%c0, %c0_0, %c0_1] : memref<2x32x216xf32, #tpu.memory_space<vmem>>, vector<1x32x216xf32>
    %1 = vector.shape_cast %0 : vector<1x32x216xf32> to vector<32x216xf32>
    %c0_2 = arith.constant 0 : index
    %c0_3 = arith.constant 0 : index
    %c0_4 = arith.constant 0 : index
    %2 = vector.load %arg2[%c0_2, %c0_3, %c0_4] : memref<2x216x128xf32, #tpu.memory_space<vmem>>, vector<1x216x128xf32>
    %3 = vector.shape_cast %2 : vector<1x216x128xf32> to vector<216x128xf32>
    %cst = arith.constant dense<0.000000e+00> : vector<32x128xf32>
    %4 = tpu.matmul %1, %3, %cst {dimension_numbers = #tpu.dot_dimension_numbers<[1], [0], [0], [1], [0, 0, 1, 1], [], []>} : vector<32x216xf32>, vector<216x128xf32>, vector<32x128xf32> -> vector<32x128xf32>
    %c0_5 = arith.constant 0 : index
    %c0_6 = arith.constant 0 : index
    %c0_7 = arith.constant 0 : index
    %5 = vector.load %arg3[%c0_5, %c0_6, %c0_7] : memref<2x1x128xf32, #tpu.memory_space<vmem>>, vector<1x1x128xf32>
    %6 = vector.shape_cast %5 : vector<1x1x128xf32> to vector<1x128xf32>
    %7 = vector.broadcast %6 : vector<1x128xf32> to vector<32x128xf32>
    %8 = arith.addf %4, %7 : vector<32x128xf32>
    %c0_8 = arith.constant 0 : index
    %c0_9 = arith.constant 0 : index
    %c0_10 = arith.constant 0 : index
    %9 = vector.load %arg4[%c0_8, %c0_9, %c0_10] : memref<2x32x128xf32, #tpu.memory_space<vmem>>, vector<1x32x128xf32>
    %10 = vector.shape_cast %9 : vector<1x32x128xf32> to vector<32x128xf32>
    %11 = vector.shape_cast %8 : vector<32x128xf32> to vector<1x32x128xf32>
    tpu.vector_store %arg4[%c0_8, %c0_9, %c0_10], %11 {strides = array<i32>} : memref<2x32x128xf32, #tpu.memory_space<vmem>>, vector<1x32x128xf32>,
    %c1 = arith.constant 1 : index
    %c0_11 = arith.constant 0 : index
    %c0_12 = arith.constant 0 : index
    %12 = vector.load %arg1[%c1, %c0_11, %c0_12] : memref<2x32x216xf32, #tpu.memory_space<vmem>>, vector<1x32x216xf32>
    %13 = vector.shape_cast %12 : vector<1x32x216xf32> to vector<32x216xf32>
    %c1_13 = arith.constant 1 : index
    %c0_14 = arith.constant 0 : index
    %c0_15 = arith.constant 0 : index
    %14 = vector.load %arg2[%c1_13, %c0_14, %c0_15] : memref<2x216x128xf32, #tpu.memory_space<vmem>>, vector<1x216x128xf32>
    %15 = vector.shape_cast %14 : vector<1x216x128xf32> to vector<216x128xf32>
    %cst_16 = arith.constant dense<0.000000e+00> : vector<32x128xf32>
    %16 = tpu.matmul %13, %15, %cst_16 {dimension_numbers = #tpu.dot_dimension_numbers<[1], [0], [0], [1], [0, 0, 1, 1], [], []>} : vector<32x216xf32>, vector<216x128xf32>, vector<32x128xf32> -> vector<32x128xf32>
    %c1_17 = arith.constant 1 : index
    %c0_18 = arith.constant 0 : index
    %c0_19 = arith.constant 0 : index
    %17 = vector.load %arg3[%c1_17, %c0_18, %c0_19] : memref<2x1x128xf32, #tpu.memory_space<vmem>>, vector<1x1x128xf32>
    %18 = vector.shape_cast %17 : vector<1x1x128xf32> to vector<1x128xf32>
    %19 = vector.broadcast %18 : vector<1x128xf32> to vector<32x128xf32>
    %20 = arith.addf %16, %19 : vector<32x128xf32>
    %c1_20 = arith.constant 1 : index
    %c0_21 = arith.constant 0 : index
    %c0_22 = arith.constant 0 : index
    %21 = vector.load %arg4[%c1_20, %c0_21, %c0_22] : memref<2x32x128xf32, #tpu.memory_space<vmem>>, vector<1x32x128xf32>
    %22 = vector.shape_cast %21 : vector<1x32x128xf32> to vector<32x128xf32>
    %23 = vector.shape_cast %20 : vector<32x128xf32> to vector<1x32x128xf32>
    tpu.vector_store %arg4[%c1_20, %c0_21, %c0_22], %23 {strides = array<i32>} : memref<2x32x128xf32, #tpu.memory_space<vmem>>, vector<1x32x128xf32>,
    return
  }
  func.func @transform_0(%arg0: i32) -> (i32, i32, i32) {
    %c0_i32 = arith.constant 0 : i32
    %c0_i32_0 = arith.constant 0 : i32
    %c0_i32_1 = arith.constant 0 : i32
    %c0_i32_2 = arith.constant 0 : i32
    return %c0_i32, %c0_i32_0, %c0_i32_1 : i32, i32, i32
  }
  func.func @transform_1(%arg0: i32) -> (i32, i32, i32) {
    %c0_i32 = arith.constant 0 : i32
    %c0_i32_0 = arith.constant 0 : i32
    %c0_i32_1 = arith.constant 0 : i32
    %c0_i32_2 = arith.constant 0 : i32
    return %c0_i32, %c0_i32_0, %c0_i32_1 : i32, i32, i32
  }
  func.func @transform_2(%arg0: i32) -> (i32, i32, i32) {
    %c0_i32 = arith.constant 0 : i32
    %c0_i32_0 = arith.constant 0 : i32
    %c0_i32_1 = arith.constant 0 : i32
    %c0_i32_2 = arith.constant 0 : i32
    return %c0_i32, %c0_i32_0, %c0_i32_1 : i32, i32, i32
  }
  func.func @transform_3(%arg0: i32) -> (i32, i32, i32) {
    %c0_i32 = arith.constant 0 : i32
    %c0_i32_0 = arith.constant 0 : i32
    %c0_i32_1 = arith.constant 0 : i32
    %c0_i32_2 = arith.constant 0 : i32
    return %c0_i32, %c0_i32_0, %c0_i32_1 : i32, i32, i32
  }
}

</mosaic_0001>

<bundles_post_ra>
// kernel: tpu_custom_call.1
= control target key start
LH: loop header
LB: loop body
LE: loop exit
PB: predicated region body
PF: predicated region fallthrough
CT: control target
= control target key end

     0   :  { %8 = vsyncpa [#allocation3], 0  ;;  %s489_s0 = inlined_call_operand.hbm [shape: f32[2,32,216], index: 0, kind: input, shape index: {}]   ;;  %s490_s1 = inlined_call_operand.hbm [shape: f32[2,216,128], index: 1, kind: input, shape index: {}]   ;;  %s491_s2 = inlined_call_operand.hbm [shape: f32[2,1,128], index: 2, kind: input, shape index: {}]   ;;  %s492_s3 = inlined_call_operand.hbm [shape: f32[2,32,128], index: 3, kind: output, shape index: {}]  }
   0x1   :  { %9 = vsyncpa [#allocation6], 0  ;;  %s28_s14 = sshll.u32 %s490_s1, 4  ;;  %s29_s14 = int_to_ptr.hbm [resolvable:$true] %s28_s14 }
   0x2   :  { %10 = vsyncpa [#allocation4], 0  ;;  %s434_s15 = smov [#allocation5]   ;;  %s15_s19 = sshll.u32 %s489_s0, 4  ;;  %s16_s19 = int_to_ptr.hbm [resolvable:$true] %s15_s19 }
   0x3   :  { %s30_s16 = sshll.u32 %s434_s15, 4  ;;  %s435_s20 = smov 128   ;;  %s31_s16 = int_to_ptr.vmem [resolvable:$true] %s30_s16 }
   0x4   :  { %s436_s21 = smov 8   ;;  %s437_s22 = smov [#allocation2]  }
   0x5   :  { %36 = dma.hbm_to_vmem [thread:$0]  %s29_s14, 6912, %s31_s16, [#allocation6], %s435_s20, %s435_s20, %s436_s21  }
   0x6   :  { %s17_s23 = sshll.u32 %s437_s22, 4  ;;  %s438_s1 = smov 256   ;;  %s18_s23 = int_to_ptr.vmem [resolvable:$true] %s17_s23 }
   0x7   :  { %s439_s24 = smov 16   ;;  %s41_s27 = sshll.u32 %s491_s2, 4  ;;  %s42_s27 = int_to_ptr.hbm [resolvable:$true] %s41_s27 }
   0x8   :  { %23 = dma.hbm_to_vmem [thread:$0]  %s16_s19, 2048, %s18_s23, [#allocation3], %s438_s1, %s438_s1, %s439_s24  }
   0x9   :  { %s440_s28 = smov [#allocation7]   ;;  %s441_s29 = smov 1  }
   0xa   :  { %s43_s0 = sshll.u32 %s440_s28, 4  ;;  %s44_s0 = int_to_ptr.vmem [resolvable:$true] %s43_s0 }
   0xb   :  { %49 = dma.hbm_to_vmem [thread:$0]  %s42_s27, 32, %s44_s0, [#allocation6], %s439_s24, %s439_s24, %s441_s29  }
   0xc   :  { %428 = dma.done.wait [#allocation3], 2048  }
   0xd   :  { %429 = vsyncadd [#allocation3], 4294965248 }
   0xe   :  { %430 = dma.done.wait [#allocation6], 6944  }
   0xf   :  { %431 = vsyncadd [#allocation6], 4294960352  ;;  %v201_v0 = vld [vmem:[#allocation5 + $0x150] sm:$0xff]  ;;  %v200_v1 = vld [vmem:[#allocation5 + $0x148] sm:$0xff]  ;;  %vm101_vm0 = vcmask 719872   ;;  %s442_s2 = smov [#allocation8]  }
  0x10   :  { %230 = vmatpush.msra.mxu2 %v201_v0  ;;  %v85_v2 = vld [vmem:[#allocation5 + $0x78] sm:$0xff]  ;;  %v84_v3 = vld [vmem:[#allocation5 + $0x70] sm:$0xff]  ;;  %v199_v4 = vld [vmem:[#allocation5 + $0x140] sm:$0xff]  ;;  %s297_s30 = sshll.u32 %s442_s2, 4  ;;  %s299_s6 = sshll.u32 %s492_s3, 4  ;;  %s298_s30 = int_to_ptr.vmem [resolvable:$true] %s297_s30  ;;  %s300_s6 = int_to_ptr.hbm [resolvable:$true] %s299_s6 }
  0x11   :  { %114 = vmatpush.msra.mxu0 %v85_v2  ;;  %v83_v5 = vld [vmem:[#allocation5 + $0x68] sm:$0xff]  ;;  %v198_v7 = vld [vmem:[#allocation5 + $0x138] sm:$0xff]  ;;  %v211_v8 = vld [vmem:[#allocation5 + $0x1a0] sm:$0xff] }
  0x12   :  { %231 = vmatpush.msra.mxu2 %v200_v1  ;;  %v212_v6 = vld [vmem:[#allocation5 + $0x1a8] sm:$0xff]  ;;  %v82_v9 = vld [vmem:[#allocation5 + $0x60] sm:$0xff]  ;;  %v210_v10 = vld [vmem:[#allocation5 + $0x198] sm:$0xff] }
  0x13   :  { %115 = vmatpush.msra.mxu0 %v84_v3  ;;  %264 = vmatpush.msra.mxu3 %v212_v6  ;;  %v197_v11 = vld [vmem:[#allocation5 + $0x130] sm:$0xff]  ;;  %v81_v13 = vld [vmem:[#allocation5 + $0x58] sm:$0xff]  ;;  %v95_v15 = vld [vmem:[#allocation5 + $0xc8] sm:$0xff] }
  0x14   :  { %232 = vmatpush.msra.mxu2 %v199_v4  ;;  %v96_v12 = vld [vmem:[#allocation5 + $0xd0] sm:$0xff]  ;;  %v196_v16 = vld [vmem:[#allocation5 + $0x128] sm:$0xff]  ;;  %v94_v19 = vld [vmem:[#allocation5 + $0xc0] sm:$0xff] }
  0x15   :  { %116 = vmatpush.msra.mxu0 %v83_v5  ;;  %265 = vmatpush.msra.mxu3 %v211_v8  ;;  %v209_v14 = vld [vmem:[#allocation5 + $0x190] sm:$0xff]  ;;  %v208_v18 = vld [vmem:[#allocation5 + $0x188] sm:$0xff]  ;;  %v195_v20 = vld [vmem:[#allocation5 + $0x120] sm:$0xff] }
  0x16   :  { %233 = vmatpush.msra.mxu2 %v198_v7  ;;  %148 = vmatpush.msra.mxu1 %v96_v12  ;;  %v80_v17 = vld [vmem:[#allocation5 + $0x50] sm:$0xff]  ;;  %v93_v21 = vld [vmem:[#allocation5 + $0xb8] sm:$0xff]  ;;  %v79_v22 = vld [vmem:[#allocation5 + $0x48] sm:$0xff] }
  0x17   :  { %117 = vmatpush.msra.mxu0 %v82_v9  ;;  %266 = vmatpush.msra.mxu3 %v210_v10  ;;  %v207_v23 = vld [vmem:[#allocation5 + $0x180] sm:$0xff]  ;;  %v194_v24 = vld [vmem:[#allocation5 + $0x118] sm:$0xff]  ;;  %v92_v25 = vld [vmem:[#allocation5 + $0xb0] sm:$0xff] }
  0x18   :  { %234 = vmatpush.msra.mxu2 %v197_v11  ;;  %149 = vmatpush.msra.mxu1 %v95_v15  ;;  %v78_v26 = vld [vmem:[#allocation5 + $0x40] sm:$0xff]  ;;  %v206_v27 = vld [vmem:[#allocation5 + $0x178] sm:$0xff]  ;;  %v193_v28 = vld [vmem:[#allocation5 + $0x110] sm:$0xff] }
  0x19   :  { %118 = vmatpush.msra.mxu0 %v81_v13  ;;  %267 = vmatpush.msra.mxu3 %v209_v14  ;;  %v91_v29 = vld [vmem:[#allocation5 + $0xa8] sm:$0xff]  ;;  %v77_v30 = vld [vmem:[#allocation5 + $0x38] sm:$0xff]  ;;  %v205_v31 = vld [vmem:[#allocation5 + $0x170] sm:$0xff] }
  0x1a   :  { %235 = vmatpush.msra.mxu2 %v196_v16  ;;  %150 = vmatpush.msra.mxu1 %v94_v19  ;;  %v192_v32 = vld [vmem:[#allocation5 + $0x108] sm:$0xff]  ;;  %v90_v33 = vld [vmem:[#allocation5 + $0xa0] sm:$0xff]  ;;  %v76_v34 = vld [vmem:[#allocation5 + $0x30] sm:$0xff] }
  0x1b   :  { %119 = vmatpush.msra.mxu0 %v80_v17  ;;  %268 = vmatpush.msra.mxu3 %v208_v18  ;;  %v204_v35 = vld [vmem:[#allocation5 + $0x168] sm:$0xff]  ;;  %v191_v36 = vld [vmem:[#allocation5 + $0x100] sm:$0xff]  ;;  %v89_v37 = vld [vmem:[#allocation5 + $0x98] sm:$0xff] }
  0x1c   :  { %236 = vmatpush.msra.mxu2 %v195_v20  ;;  %151 = vmatpush.msra.mxu1 %v93_v21  ;;  %v75_v38 = vld [vmem:[#allocation5 + $0x28] sm:$0xff]  ;;  %v203_v39 = vld [vmem:[#allocation5 + $0x160] sm:$0xff]  ;;  %v190_v40 = vld [vmem:[#allocation5 + $0xf8] sm:$0xff] }
  0x1d   :  { %120 = vmatpush.msra.mxu0 %v79_v22  ;;  %269 = vmatpush.msra.mxu3 %v207_v23  ;;  %v88_v41 = vld [vmem:[#allocation5 + $0x90] sm:$0xff]  ;;  %v74_v43 = vld [vmem:[#allocation5 + $0x20] sm:$0xff]  ;;  %v202_v44 = vld [vmem:[#allocation5 + $0x158] sm:$0xff] }
  0x1e   :  { %237 = vmatpush.msra.mxu2 %v194_v24  ;;  %152 = vmatpush.msra.mxu1 %v92_v25  ;;  %v189_v42 = vld [vmem:[#allocation5 + $0xf0] sm:$0xff]  ;;  %v178_v45 = vld [vmem:[#allocation2 + $0x48] sm:$0xff]  ;;  %v73_v46 = vld [vmem:[#allocation5 + $0x18] sm:$0xff] }
  0x1f   :  { %121 = vmatpush.msra.mxu0 %v78_v26  ;;  %270 = vmatpush.msra.mxu3 %v206_v27  ;;  %v87_v47 = vld [vmem:[#allocation5 + $0x88] sm:$0xff]  ;;  %v72_v49 = vld [vmem:[#allocation5 + $0x10] sm:$0xff]  ;;  %v86_v50 = vld [vmem:[#allocation5 + $0x80] sm:$0xff] }
  0x20   :  { %238 = vmatpush.msra.mxu2 %v193_v28  ;;  %153 = vmatpush.msra.mxu1 %v91_v29  ;;  %v188_v48 = vld [vmem:[#allocation5 + $0xe8] sm:$0xff]  ;;  %v187_v51 = vld [vmem:[#allocation5 + $0xe0] sm:$0xff]  ;;  %v186_v54 = vld [vmem:[#allocation5 + $0xd8] sm:$0xff] }
  0x21   :  { %122 = vmatpush.msra.mxu0 %v77_v30  ;;  %271 = vmatpush.msra.mxu3 %v205_v31  ;;  %v63_v52 = vld [vmem:[#allocation2 + $0x8] sm:$0xff]  ;;  %v177_v55 = vld [vmem:[#allocation2 + $0x40] sm:$0xff]  ;;  %v180_v58 = vld [vmem:[#allocation2 + $0x58] sm:$0xff] }
  0x22   :  { %239 = vmatpush.msra.mxu2 %v192_v32  ;;  %154 = vmatpush.msra.mxu1 %v90_v33  ;;  %v71_v53 = vld [vmem:[#allocation5 + $0x8] sm:$0xff]  ;;  %v70_v56 = vld [vmem:[#allocation5] sm:$0xff]  ;;  %v65_v59 = vld [vmem:[#allocation2 + $0x18] sm:$0xff] }
  0x23   :  { %123 = vmatpush.msra.mxu0 %v76_v34  ;;  %272 = vmatpush.msra.mxu3 %v204_v35  ;;  %v62_v57 = vld [vmem:[#allocation2] sm:$0xff]  ;;  %v179_v60 = vld [vmem:[#allocation2 + $0x50] sm:$0xff]  ;;  %v182_v62 = vld [vmem:[#allocation2 + $0x68] sm:$0xff] }
  0x24   :  { %240 = vmatpush.msra.mxu2 %v191_v36  ;;  %155 = vmatpush.msra.mxu1 %v89_v37  ;;  %v64_v61 = vld [vmem:[#allocation2 + $0x10] sm:$0xff]  ;;  %v67_v63 = vld [vmem:[#allocation2 + $0x28] sm:$0xff]  ;;  %v181_v0 = vld [vmem:[#allocation2 + $0x60] sm:$0xff] }
  0x25   :  { %124 = vmatpush.msra.mxu0 %v75_v38  ;;  %273 = vmatpush.msra.mxu3 %v203_v39  ;;  %v66_v1 = vld [vmem:[#allocation2 + $0x20] sm:$0xff]  ;;  %v184_v2 = vld [vmem:[#allocation2 + $0x78] sm:$0xff]  ;;  %v183_v4 = vld [vmem:[#allocation2 + $0x70] sm:$0xff] }
  0x26   :  { %241 = vmatpush.msra.mxu2 %v190_v40  ;;  %156 = vmatpush.msra.mxu1 %v88_v41  ;;  %v69_v3 = vld [vmem:[#allocation2 + $0x38] sm:$0xff]  ;;  %v68_v5 = vld [vmem:[#allocation2 + $0x30] sm:$0xff] }
  0x27   :  { %125 = vmatpush.msra.mxu0 %v74_v43  ;;  %274 = vmatpush.msra.mxu3 %v202_v44  ;;  %v330_v7 = vld [vmem:[#allocation7] ss:$0 sm:$0xff]  ;;  %v331_v11 = vld [vmem:[#allocation7 + $0x1] ss:$0 sm:$0xff] }
  0x28   :  { %242 = vmatpush.msra.mxu2 %v189_v42  ;;  %317 = vmatmul.msk.f32.vlgmr.msra.gmra.mxu3 %vm101_vm0, %v178_v45 }
  0x29   :  { %126 = vmatpush.msra.mxu0 %v73_v46  ;;  %157 = vmatpush.msra.mxu1 %v87_v47 }
  0x2a   :  { %243 = vmatpush.msra.mxu2 %v188_v48 }
  0x2b   :  { %127 = vmatpush.msra.mxu0 %v72_v49  ;;  %158 = vmatpush.msra.mxu1 %v86_v50 }
  0x2c   :  { %244 = vmatpush.msra.mxu2 %v187_v51  ;;  %313 = vmatmul.msk.f32.vlgmr.msra.gmra.mxu1 %vm101_vm0, %v63_v52 }
  0x2d   :  { %128 = vmatpush.msra.mxu0 %v71_v53 }
  0x2e   :  { %245 = vmatpush.msra.mxu2 %v186_v54 }
  0x2f   :  { %246 = vmatmul.f32.vlgmr.msra.gmra.mxu2 %v177_v55  ;;  %129 = vmatpush.msra.mxu0 %v70_v56 }
  0x30   :  { %130 = vmatmul.f32.vlgmr.msra.gmra.mxu0 %v62_v57  ;;  %318 = vmatmul.msk.f32.gmra.mxu3 %vm101_vm0, %v180_v58 }
  0x34   :  { %314 = vmatmul.msk.f32.gmra.mxu1 %vm101_vm0, %v65_v59 }
  0x37   :  { %249 = vmatmul.f32.gmra.mxu2 %v179_v60 }
  0x38   :  { %133 = vmatmul.f32.gmra.mxu0 %v64_v61  ;;  %319 = vmatmul.msk.f32.gmra.mxu3 %vm101_vm0, %v182_v62 }
  0x3c   :  { %315 = vmatmul.msk.f32.gmra.mxu1 %vm101_vm0, %v67_v63 }
  0x3f   :  { %252 = vmatmul.f32.gmra.mxu2 %v181_v0 }
  0x40   :  { %136 = vmatmul.f32.gmra.mxu0 %v66_v1  ;;  %320 = vmatmul.msk.f32.gmra.mxu3 %vm101_vm0, %v184_v2 }
  0x44   :  { %316 = vmatmul.msk.f32.gmra.mxu1 %vm101_vm0, %v69_v3 }
  0x47   :  { %255 = vmatmul.f32.gmra.mxu2 %v183_v4 }
  0x48   :  { %139 = vmatmul.f32.gmra.mxu0 %v68_v5 }
  0xa9   :  { %v160_v6 = vpop.f32.mrf.mxu1 }
  0xab   :  { %v276_v8 = vpop.f32.mrf.mxu3 }
  0xad   :  { %v131_v9 = vpop.f32.mrf.mxu0 }
  0xae   :  { %v132_v10 = vadd.f32 %v330_v7, %v131_v9 }
  0xb0   :  { %v161_v12 = vadd.f32 %v160_v6, %v132_v10 }
  0xb1   :  { %v163_v13 = vpop.f32.mrf.mxu1 }
  0xb2   :  { %v247_v14 = vpop.f32.mrf.mxu2  ;;  %172 = vst [vmem:[#allocation8] sm:$0xff] %v161_v12 }
  0xb3   :  { %v248_v15 = vadd.f32 %v331_v11, %v247_v14  ;;  %v279_v19 = vpop.f32.mrf.mxu3 }
  0xb5   :  { %v277_v16 = vadd.f32 %v276_v8, %v248_v15  ;;  %v134_v17 = vpop.f32.mrf.mxu0 }
  0xb6   :  { %v135_v18 = vadd.f32 %v330_v7, %v134_v17 }
  0xb7   :  { %289 = vst [vmem:[#allocation8 + $0x20] sm:$0xff] %v277_v16 }
  0xb8   :  { %v164_v20 = vadd.f32 %v163_v13, %v135_v18 }
  0xb9   :  { %v166_v23 = vpop.f32.mrf.mxu1 }
  0xba   :  { %v250_v21 = vpop.f32.mrf.mxu2  ;;  %173 = vst [vmem:[#allocation8 + $0x8] sm:$0xff] %v164_v20 }
  0xbb   :  { %v251_v22 = vadd.f32 %v331_v11, %v250_v21  ;;  %v282_v28 = vpop.f32.mrf.mxu3 }
  0xbd   :  { %v280_v24 = vadd.f32 %v279_v19, %v251_v22  ;;  %v137_v25 = vpop.f32.mrf.mxu0 }
  0xbe   :  { %v138_v26 = vadd.f32 %v330_v7, %v137_v25 }
  0xbf   :  { %290 = vst [vmem:[#allocation8 + $0x28] sm:$0xff] %v280_v24 }
  0xc0   :  { %v167_v27 = vadd.f32 %v166_v23, %v138_v26 }
  0xc1   :  { %v169_v33 = vpop.f32.mrf.mxu1 }
  0xc2   :  { %v253_v29 = vpop.f32.mrf.mxu2  ;;  %174 = vst [vmem:[#allocation8 + $0x10] sm:$0xff] %v167_v27 }
  0xc3   :  { %v254_v30 = vadd.f32 %v331_v11, %v253_v29  ;;  %v285_v37 = vpop.f32.mrf.mxu3 }
  0xc5   :  { %v283_v31 = vadd.f32 %v282_v28, %v254_v30  ;;  %v140_v32 = vpop.f32.mrf.mxu0 }
  0xc6   :  { %v141_v34 = vadd.f32 %v330_v7, %v140_v32 }
  0xc7   :  { %291 = vst [vmem:[#allocation8 + $0x30] sm:$0xff] %v283_v31 }
  0xc8   :  { %v170_v35 = vadd.f32 %v169_v33, %v141_v34 }
  0xca   :  { %v256_v36 = vpop.f32.mrf.mxu2  ;;  %175 = vst [vmem:[#allocation8 + $0x18] sm:$0xff] %v170_v35 }
  0xcb   :  { %v257_v38 = vadd.f32 %v331_v11, %v256_v36 }
  0xcd   :  { %v286_v39 = vadd.f32 %v285_v37, %v257_v38 }
  0xcf   :  { %292 = vst [vmem:[#allocation8 + $0x38] sm:$0xff] %v286_v39 }
  0xd0   :  { %305 = dma.vmem_to_hbm [thread:$0]  %s298_s30, 1024, %s300_s6, [#allocation4], %s435_s20, %s435_s20, %s436_s21  }
  0xd1   :  { %432 = dma.done.wait [#allocation4], 1024  }
  0xd2   :  { %433 = vsyncadd [#allocation4], 4294966272 }
  0xd3   :  { %310 = vsyncpa [#allocation3], 1 }
  0xd4   :  { %311 = vsyncpa [#allocation6], 1 }
  0xd5   :  { %312 = vsyncpa [#allocation4], 1 }

</bundles_post_ra>
